<compile_context>
chip_gen: v7x
topology: tpu7x:2x2x1
jax: 0.10.0
libtpu: 0.0.40
codegen_flags: <defaults>
</compile_context>

<pallas_src>
import math

import jax
import jax.numpy as jnp
from jax import lax
from jax.experimental import pallas as pl
from jax.experimental.pallas import tpu as pltpu

# ----------------------------- configuration -------------------------------
B = 2          # batch
S = 8          # sequence length
E = 32         # hidden_size
N = B * S      # total rows processed in one kernel invocation
EPS = 1e-5     # nn.LayerNorm default eps
SLOPE = 0.01   # nn.LeakyReLU default negative_slope

# Packed-parameter layout inside the single (2*E + 8, E) array:
#   rows [0,  E)      : W1.T
#   rows [E,  2E)     : W2.T
#   rows 2E + 0 .. 5  : b1, gamma1, beta1, b2, gamma2, beta2
#   rows 2E + 6 .. 7  : zero padding (sublane count stays a multiple of 8)
_VEC0 = 2 * E
P_ROWS = 2 * E + 8


# ------------------------------ Pallas kernel ------------------------------
def _resblock_kernel(x_ref, p_ref, o_ref):
    # x_ref: (N, E) — all rows of the flattened input (whole array in VMEM).
    # p_ref: (2*E + 8, E) — packed parameters (see layout above).
    x = x_ref[...].astype(jnp.float32)

    w1 = p_ref[0:E, :]                       # (E, E) == W1.T
    w2 = p_ref[E:2 * E, :]                   # (E, E) == W2.T
    vecs = p_ref[_VEC0:_VEC0 + 8, :]         # (8, E) — one sublane-aligned load
    b1, g1, be1 = vecs[0:1, :], vecs[1:2, :], vecs[2:3, :]
    b2, g2, be2 = vecs[3:4, :], vecs[4:5, :], vecs[5:6, :]

    def layer_norm(h, gamma, beta):
        # Two independent cross-lane reductions (E[h] and E[h^2]) so the XLU
        # work can issue back-to-back; rsqrt goes to the EUP slot.
        mean = jnp.mean(h, axis=-1, keepdims=True)
        mean_sq = jnp.mean(h * h, axis=-1, keepdims=True)
        var = mean_sq - mean * mean
        return (h - mean) * lax.rsqrt(var + EPS) * gamma + beta

    def leaky_relu(h):
        return jnp.where(h >= 0, h, SLOPE * h)

    # --- Linear 1 + LayerNorm 1 + LeakyReLU (Dropout = identity, eval) ---
    h = jnp.dot(x, w1, preferred_element_type=jnp.float32) + b1
    h = leaky_relu(layer_norm(h, g1, be1))

    # --- Linear 2 + LayerNorm 2 + LeakyReLU (Dropout = identity, eval) ---
    h = jnp.dot(h, w2, preferred_element_type=jnp.float32) + b2
    h = leaky_relu(layer_norm(h, g2, be2))

    # --- residual ---
    o_ref[...] = (x + h).astype(o_ref.dtype)


def residual_block_pallas(x, params):
    """x: (B, S, E) float32.  params: (2*E + 8, E) packed parameter array."""
    b, s, e = x.shape
    n = b * s
    x2d = x.reshape(n, e)

    cost = pl.CostEstimate(
        flops=2 * (2 * n * e * e),            # two (n,e)@(e,e) matmuls
        transcendentals=2 * n,                # one rsqrt per row per LayerNorm
        bytes_accessed=(n * e + params.shape[0] * e + n * e) * 4,
    )

    out2d = pl.pallas_call(
        _resblock_kernel,
        out_shape=jax.ShapeDtypeStruct((n, e), x.dtype),
        in_specs=[
            pl.BlockSpec(memory_space=pltpu.MemorySpace.VMEM),  # x (whole array)
            pl.BlockSpec(memory_space=pltpu.MemorySpace.VMEM),  # packed params
        ],
        out_specs=pl.BlockSpec(memory_space=pltpu.MemorySpace.VMEM),
        input_output_aliases={0: 0},          # reuse x2d's buffer for the output
        cost_estimate=cost,
    )(x2d, params)

    return out2d.reshape(b, s, e)


def pack_params(W1, b1, g1, be1, W2, b2, g2, be2):
    """Pack all module parameters into the single (2*E + 8, E) kernel array."""
    e = W1.shape[0]
    return jnp.concatenate(
        [W1.T, W2.T,
         jnp.stack([b1, g1, be1, b2, g2, be2], axis=0),
         jnp.zeros((2, e), jnp.float32)],
        axis=0)


# ------------------------- pure-JAX reference (check) ----------------------
def residual_block_ref(x, W1, b1, g1, be1, W2, b2, g2, be2):
    def ln(h, gamma, beta):
        m = jnp.mean(h, axis=-1, keepdims=True)
        v = jnp.mean((h - m) ** 2, axis=-1, keepdims=True)
        return (h - m) / jnp.sqrt(v + EPS) * gamma + beta

    h = x @ W1.T + b1
    h = ln(h, g1, be1)
    h = jnp.where(h >= 0, h, SLOPE * h)
    h = h @ W2.T + b2
    h = ln(h, g2, be2)
    h = jnp.where(h >= 0, h, SLOPE * h)
    return x + h


# --------------------------------- main -------------------------------------
if __name__ == "__main__":
    key = jax.random.PRNGKey(0)
    kx, kw1, kb1, kw2, kb2, kg1, kbe1, kg2, kbe2 = jax.random.split(key, 9)

    # Input (B, S, E) — any (..., hidden_size) works for this module.
    x = jax.random.normal(kx, (B, S, E), dtype=jnp.float32)

    # Parameters (PyTorch Linear-style init; LayerNorm affine params randomized
    # to exercise the full code path).
    bound = 1.0 / math.sqrt(E)
    W1 = jax.random.uniform(kw1, (E, E), jnp.float32, -bound, bound)
    b1 = jax.random.uniform(kb1, (E,), jnp.float32, -bound, bound)
    W2 = jax.random.uniform(kw2, (E, E), jnp.float32, -bound, bound)
    b2 = jax.random.uniform(kb2, (E,), jnp.float32, -bound, bound)
    g1 = 1.0 + 0.1 * jax.random.normal(kg1, (E,), jnp.float32)
    be1 = 0.1 * jax.random.normal(kbe1, (E,), jnp.float32)
    g2 = 1.0 + 0.1 * jax.random.normal(kg2, (E,), jnp.float32)
    be2 = 0.1 * jax.random.normal(kbe2, (E,), jnp.float32)

    params = pack_params(W1, b1, g1, be1, W2, b2, g2, be2)   # (72, 32)
    assert params.shape == (P_ROWS, E)

    out = residual_block_pallas(x, params)
    out = jax.block_until_ready(out)

    ref = residual_block_ref(x, W1, b1, g1, be1, W2, b2, g2, be2)
    assert out.shape == (B, S, E)
    assert jnp.allclose(out, ref, atol=1e-4, rtol=1e-4), "mismatch vs reference"

    print("KERNEL_OK")
</pallas_src>

<mosaic_0001>
module attributes {stable_mosaic.version = 11 : i64} {
  func.func @_resblock_kernel(%arg0: memref<16x32xf32, #tpu.memory_space<vmem>>, %arg1: memref<72x32xf32, #tpu.memory_space<vmem>>, %arg2: memref<16x32xf32, #tpu.memory_space<vmem>>) attributes {dimension_semantics = [], scalar_prefetch = 0 : i64, scratch_operands = 0 : i64, tpu.core_type = #tpu.core_type<tc>} {
    %c0 = arith.constant 0 : index
    %c0_0 = arith.constant 0 : index
    %0 = vector.load %arg0[%c0, %c0_0] : memref<16x32xf32, #tpu.memory_space<vmem>>, vector<16x32xf32>
    %c0_1 = arith.constant 0 : index
    %c0_2 = arith.constant 0 : index
    %1 = vector.load %arg1[%c0_1, %c0_2] : memref<72x32xf32, #tpu.memory_space<vmem>>, vector<32x32xf32>
    %c32 = arith.constant 32 : index
    %c0_3 = arith.constant 0 : index
    %2 = vector.load %arg1[%c32, %c0_3] : memref<72x32xf32, #tpu.memory_space<vmem>>, vector<32x32xf32>
    %c64 = arith.constant 64 : index
    %c0_4 = arith.constant 0 : index
    %3 = vector.load %arg1[%c64, %c0_4] : memref<72x32xf32, #tpu.memory_space<vmem>>, vector<8x32xf32>
    %4 = vector.extract_strided_slice %3 {offsets = [0, 0], sizes = [1, 32], strides = [1, 1]} : vector<8x32xf32> to vector<1x32xf32>
    %5 = vector.extract_strided_slice %3 {offsets = [1, 0], sizes = [1, 32], strides = [1, 1]} : vector<8x32xf32> to vector<1x32xf32>
    %6 = vector.extract_strided_slice %3 {offsets = [2, 0], sizes = [1, 32], strides = [1, 1]} : vector<8x32xf32> to vector<1x32xf32>
    %7 = vector.extract_strided_slice %3 {offsets = [3, 0], sizes = [1, 32], strides = [1, 1]} : vector<8x32xf32> to vector<1x32xf32>
    %8 = vector.extract_strided_slice %3 {offsets = [4, 0], sizes = [1, 32], strides = [1, 1]} : vector<8x32xf32> to vector<1x32xf32>
    %9 = vector.extract_strided_slice %3 {offsets = [5, 0], sizes = [1, 32], strides = [1, 1]} : vector<8x32xf32> to vector<1x32xf32>
    %cst = arith.constant dense<0.000000e+00> : vector<16x32xf32>
    %10 = tpu.matmul %0, %1, %cst {dimension_numbers = #tpu.dot_dimension_numbers<[1], [0], [0], [1], [0, 0, 1, 1], [], []>} : vector<16x32xf32>, vector<32x32xf32>, vector<16x32xf32> -> vector<16x32xf32>
    %11 = vector.broadcast %4 : vector<1x32xf32> to vector<16x32xf32>
    %12 = arith.addf %10, %11 : vector<16x32xf32>
    %cst_5 = arith.constant dense<0.000000e+00> : vector<16xf32>
    %13 = vector.multi_reduction <add>, %12, %cst_5 [1] : vector<16x32xf32> to vector<16xf32>
    %14 = vector.shape_cast %13 : vector<16xf32> to vector<16x1xf32>
    %cst_6 = arith.constant 3.200000e+01 : f32
    %15 = vector.broadcast %cst_6 : f32 to vector<16x1xf32>
    %16 = arith.divf %14, %15 : vector<16x1xf32>
    %17 = arith.mulf %12, %12 : vector<16x32xf32>
    %cst_7 = arith.constant dense<0.000000e+00> : vector<16xf32>
    %18 = vector.multi_reduction <add>, %17, %cst_7 [1] : vector<16x32xf32> to vector<16xf32>
    %19 = vector.shape_cast %18 : vector<16xf32> to vector<16x1xf32>
    %cst_8 = arith.constant 3.200000e+01 : f32
    %20 = vector.broadcast %cst_8 : f32 to vector<16x1xf32>
    %21 = arith.divf %19, %20 : vector<16x1xf32>
    %22 = arith.mulf %16, %16 : vector<16x1xf32>
    %23 = arith.subf %21, %22 : vector<16x1xf32>
    %24 = vector.broadcast %16 : vector<16x1xf32> to vector<16x32xf32>
    %25 = arith.subf %12, %24 : vector<16x32xf32>
    %cst_9 = arith.constant 9.99999974E-6 : f32
    %26 = vector.broadcast %cst_9 : f32 to vector<16x1xf32>
    %27 = arith.addf %23, %26 : vector<16x1xf32>
    %28 = math.rsqrt %27 : vector<16x1xf32>
    %29 = vector.broadcast %28 : vector<16x1xf32> to vector<16x32xf32>
    %30 = arith.mulf %25, %29 : vector<16x32xf32>
    %31 = vector.broadcast %5 : vector<1x32xf32> to vector<16x32xf32>
    %32 = arith.mulf %30, %31 : vector<16x32xf32>
    %33 = vector.broadcast %6 : vector<1x32xf32> to vector<16x32xf32>
    %34 = arith.addf %32, %33 : vector<16x32xf32>
    %cst_10 = arith.constant 0.000000e+00 : f32
    %35 = vector.broadcast %cst_10 : f32 to vector<16x32xf32>
    %36 = arith.cmpf oge, %34, %35 : vector<16x32xf32>
    %cst_11 = arith.constant 0.00999999977 : f32
    %37 = vector.broadcast %cst_11 : f32 to vector<16x32xf32>
    %38 = arith.mulf %37, %34 : vector<16x32xf32>
    %39 = arith.select %36, %34, %38 : vector<16x32xi1>, vector<16x32xf32>
    %cst_12 = arith.constant dense<0.000000e+00> : vector<16x32xf32>
    %40 = tpu.matmul %39, %2, %cst_12 {dimension_numbers = #tpu.dot_dimension_numbers<[1], [0], [0], [1], [0, 0, 1, 1], [], []>} : vector<16x32xf32>, vector<32x32xf32>, vector<16x32xf32> -> vector<16x32xf32>
    %41 = vector.broadcast %7 : vector<1x32xf32> to vector<16x32xf32>
    %42 = arith.addf %40, %41 : vector<16x32xf32>
    %cst_13 = arith.constant dense<0.000000e+00> : vector<16xf32>
    %43 = vector.multi_reduction <add>, %42, %cst_13 [1] : vector<16x32xf32> to vector<16xf32>
    %44 = vector.shape_cast %43 : vector<16xf32> to vector<16x1xf32>
    %cst_14 = arith.constant 3.200000e+01 : f32
    %45 = vector.broadcast %cst_14 : f32 to vector<16x1xf32>
    %46 = arith.divf %44, %45 : vector<16x1xf32>
    %47 = arith.mulf %42, %42 : vector<16x32xf32>
    %cst_15 = arith.constant dense<0.000000e+00> : vector<16xf32>
    %48 = vector.multi_reduction <add>, %47, %cst_15 [1] : vector<16x32xf32> to vector<16xf32>
    %49 = vector.shape_cast %48 : vector<16xf32> to vector<16x1xf32>
    %cst_16 = arith.constant 3.200000e+01 : f32
    %50 = vector.broadcast %cst_16 : f32 to vector<16x1xf32>
    %51 = arith.divf %49, %50 : vector<16x1xf32>
    %52 = arith.mulf %46, %46 : vector<16x1xf32>
    %53 = arith.subf %51, %52 : vector<16x1xf32>
    %54 = vector.broadcast %46 : vector<16x1xf32> to vector<16x32xf32>
    %55 = arith.subf %42, %54 : vector<16x32xf32>
    %cst_17 = arith.constant 9.99999974E-6 : f32
    %56 = vector.broadcast %cst_17 : f32 to vector<16x1xf32>
    %57 = arith.addf %53, %56 : vector<16x1xf32>
    %58 = math.rsqrt %57 : vector<16x1xf32>
    %59 = vector.broadcast %58 : vector<16x1xf32> to vector<16x32xf32>
    %60 = arith.mulf %55, %59 : vector<16x32xf32>
    %61 = vector.broadcast %8 : vector<1x32xf32> to vector<16x32xf32>
    %62 = arith.mulf %60, %61 : vector<16x32xf32>
    %63 = vector.broadcast %9 : vector<1x32xf32> to vector<16x32xf32>
    %64 = arith.addf %62, %63 : vector<16x32xf32>
    %cst_18 = arith.constant 0.000000e+00 : f32
    %65 = vector.broadcast %cst_18 : f32 to vector<16x32xf32>
    %66 = arith.cmpf oge, %64, %65 : vector<16x32xf32>
    %cst_19 = arith.constant 0.00999999977 : f32
    %67 = vector.broadcast %cst_19 : f32 to vector<16x32xf32>
    %68 = arith.mulf %67, %64 : vector<16x32xf32>
    %69 = arith.select %66, %64, %68 : vector<16x32xi1>, vector<16x32xf32>
    %70 = arith.addf %0, %69 : vector<16x32xf32>
    %c0_20 = arith.constant 0 : index
    %c0_21 = arith.constant 0 : index
    %71 = vector.load %arg2[%c0_20, %c0_21] : memref<16x32xf32, #tpu.memory_space<vmem>>, vector<16x32xf32>
    tpu.vector_store %arg2[%c0_20, %c0_21], %70 {strides = array<i32>} : memref<16x32xf32, #tpu.memory_space<vmem>>, vector<16x32xf32>,
    return
  }
}

</mosaic_0001>

<bundles_post_ra>
// kernel: tpu_custom_call.1
= control target key start
LH: loop header
LB: loop body
LE: loop exit
PB: predicated region body
PF: predicated region fallthrough
CT: control target
= control target key end

     0   :  { %7 = vsyncpa [#allocation3], 0  ;;  %s554_s0 = inlined_call_operand.hbm [shape: f32[16,32], index: 0, kind: input, shape index: {}, may-alias: {0,2}]   ;;  %s555_s1 = inlined_call_operand.vmem [shape: f32[72,32], index: 1, kind: input, shape index: {}]   ;;  %s556_s2 = inlined_call_operand.hbm [shape: f32[16,32], index: 2, kind: output, shape index: {}, may-alias: {0,2}]  }
   0x1   :  { %8 = vsyncpa [#allocation4], 0  ;;  %s440_s9 = smov [#allocation2]   ;;  %s392_s13 = scalar_lea.hbm %s554_s0, 256 }
   0x2   :  { %s14_s10 = sshll.u32 %s440_s9, 4  ;;  %p393_p0 = scmp.ne.s32.totalorder %s554_s0, %s392_s13  ;;  %s15_s10 = int_to_ptr.vmem [resolvable:$true] %s14_s10 }
   0x3   :  { %p396_p1 = scmp.lt.u32.totalorder %s392_s13, %s554_s0 }
   0x5   :  { %p398_p2 = pnand %p396_p1, %p393_p0 }
   0x7   :  { %401 = shalt.err (!%p398_p2)
}
   0x8   :  { %s402_s18 = scalar_lea.vmem %s15_s10, 256  ;;  %p407_p4 = scmp.lt.s32.totalorder %s15_s10, %s15_s10 }
   0x9   :  { %p403_p3 = scmp.ne.s32.totalorder %s15_s10, %s402_s18  ;;  %p408_p5 = scmp.lt.s32.totalorder %s402_s18, %s402_s18 }
   0xb   :  { %p409_p6 = por %p408_p5, %p407_p4 }
   0xd   :  { %p410_p7 = pnand %p409_p6, %p403_p3 }
   0xf   :  { %413 = shalt.err (!%p410_p7)
}
  0x10   :  { %s441_s19 = smov 128   ;;  %s442_s20 = smov 8  }
  0x11   :  { %20 = dma.hbm_to_vmem [thread:$0]  %s554_s0, 256, %s15_s10, [#allocation3], %s441_s19, %s441_s19, %s442_s20  }
  0x12   :  { %436 = dma.done.wait [#allocation3], 256  }
  0x13   :  { %437 = vsyncadd [#allocation3], 4294967040  ;;  %vm41_vm0 = vcmask 261120   ;;  %v28_v0 = vld [vmem:[%s555_s1] sm:$0xff]  ;;  %v29_v1 = vld [vmem:[%s555_s1 + $0x8] sm:$0xff]  ;;  %v37_v8 = vlaneseq }
  0x14   :  { %v30_v2 = vld [vmem:[%s555_s1 + $0x10] sm:$0xff]  ;;  %v364_v3 = vpack.c.bf16 %v29_v1, %v28_v0  ;;  %v31_v4 = vld [vmem:[%s555_s1 + $0x18] sm:$0xff]  ;;  %v486_v5 = vld [vmem:[#allocation2] sm:$0xff] }
  0x15   :  { %v368_v6 = vpack.c.bf16 %v31_v4, %v30_v2  ;;  %350 = vmatprep.mubr.msk.f32.mxu0 %vm41_vm0, %v486_v5  ;;  %v490_v7 = vld [vmem:[#allocation2 + $0x8] sm:$0xff]  ;;  %v494_v9 = vshrl.u32 %v37_v8, 7  ;;  %v500_v11 = vld [vmem:[%s555_s1 + $0x40] sm:$0xff]  ;;  %v34_v25 = vld [vmem:[%s555_s1 + $0x30] sm:$0xff] }
  0x16   :  { %365 = vmatprep.subr.bf16.mxu0 %v364_v3  ;;  %v32_v23 = vld [vmem:[%s555_s1 + $0x20] sm:$0xff]  ;;  %v33_v24 = vld [vmem:[%s555_s1 + $0x28] sm:$0xff]  ;;  %v35_v27 = vld [vmem:[%s555_s1 + $0x38] sm:$0xff]  ;;  %s443_s1 = smov [#allocation5]  }
  0x17   :  { %367 = vmatpush3.bf16.msra.mxu0 %v364_v3  ;;  %v39_v10 = vsub.s32 0, %v494_v9  ;;  %v372_v26 = vpack.c.bf16 %v33_v24, %v32_v23  ;;  %v376_v28 = vpack.c.bf16 %v35_v27, %v34_v25  ;;  %v156_v43 = vsub.s32 1, %v494_v9  ;;  %s314_s12 = sshll.u32 %s443_s1, 4  ;;  %s315_s12 = int_to_ptr.vmem [resolvable:$true] %s314_s12 }
  0x18   :  { %369 = vmatprep.subr.bf16.mxu0 %v368_v6  ;;  %v162_v44 = vsub.s32 2, %v494_v9  ;;  %v174_v61 = vsub.s32 3, %v494_v9  ;;  %v289_v27 = vsub.s32 4, %v494_v9  ;;  %s414_s13 = scalar_lea.vmem %s315_s12, 256  ;;  %p419_p9 = scmp.lt.s32.totalorder %s315_s12, %s315_s12 }
  0x19   :  { %v40_v12 = vrot.slane %v500_v11, %v39_v10  ;;  %373 = vmatprep.subr.bf16.mxu1 %v372_v26  ;;  %v157_v46 = vrot.slane %v500_v11, %v156_v43  ;;  %p415_p8 = scmp.ne.s32.totalorder %s315_s12, %s414_s13  ;;  %p420_p10 = scmp.lt.s32.totalorder %s414_s13, %s414_s13 }
  0x1a   :  { %375 = vmatpush3.bf16.msra.mxu1 %v372_v26  ;;  %v163_v49 = vrot.slane %v500_v11, %v162_v44  ;;  %v175_v62 = vrot.slane %v500_v11, %v174_v61 }
  0x1b   :  { %371 = vmatpush3.bf16.msra.mxu0 %v368_v6  ;;  %377 = vmatprep.subr.bf16.mxu1 %v376_v28  ;;  %p421_p11 = por %p420_p10, %p419_p9 }
  0x1d   :  { %p422_p12 = pnand %p421_p11, %p415_p8 }
  0x1e   :  { %351 = vmatmul.mubr.msk.f32.vlgmr.msra.gmra.mrb[0].mxu0 %vm41_vm0, %v490_v7  ;;  %379 = vmatpush3.bf16.msra.mxu1 %v376_v28  ;;  %v295_v28 = vsub.s32 5, %v494_v9 }
  0xf1   :  { %v352_v13 = vpop.f32.mrb[0].mxu0 }
  0xf2   :  { %v114_v14 = vpop.f32.mrb[1].mxu0  ;;  %v120_v15 = vadd.f32 %v352_v13, %v40_v12 }
  0xf3   :  { %v115_v16 = vadd.f32 %v114_v14, %v40_v12 }
  0xf4   :  { %v133_v20 = vmul.f32 %v120_v15, %v120_v15  ;;  %v126_v21 = vsel %vm41_vm0, %v120_v15, 0.0 }
  0xf5   :  { %v123_v17 = vsel %vm41_vm0, %v115_v16, 0.0  ;;  %v132_v18 = vmul.f32 %v115_v16, %v115_v16 }
  0xf6   :  { %124 = vadd.xlane.f32.xlu0 %v123_v17  ;;  %v137_v22 = vsel %vm41_vm0, %v133_v20, 0.0 }
  0xf7   :  { %v134_v19 = vsel %vm41_vm0, %v132_v18, 0.0 }
  0xf8   :  { %135 = vadd.xlane.f32.xlu1 %v134_v19 }
  0xfa   :  { %127 = vadd.xlane.f32.xlu0 %v126_v21 }
  0xfc   :  { %138 = vadd.xlane.f32.xlu1 %v137_v22 }
 0x183   :  { %v125_v29 = vpop.xlane.xlu0 %124 }
 0x184   :  { %v130_v30 = vmul.f32 0.03125, %v125_v29 }
 0x185   :  { %v136_v31 = vpop.xlane.xlu1 %135 }
 0x186   :  { %v142_v32 = vmul.f32 %v130_v30, %v130_v30  ;;  %v140_v33 = vmul.f32 0.03125, %v136_v31  ;;  %v146_v45 = vsub.f32 %v115_v16, %v130_v30  ;;  %v290_v30 = vrot.slane %v500_v11, %v289_v27 }
 0x187   :  { %v128_v34 = vpop.xlane.xlu0 %127 }
 0x188   :  { %v144_v35 = vsub.f32 %v140_v33, %v142_v32  ;;  %v131_v36 = vmul.f32 0.03125, %v128_v34 }
 0x189   :  { %v139_v37 = vpop.xlane.xlu1 %138 }
 0x18a   :  { %v148_v38 = vadd.f32 1e-05, %v144_v35  ;;  %v143_v39 = vmul.f32 %v131_v36, %v131_v36  ;;  %v141_v40 = vmul.f32 0.03125, %v139_v37  ;;  %v147_v50 = vsub.f32 %v120_v15, %v131_v36 }
 0x18b   :  { %v296_v35 = vrot.slane %v500_v11, %v295_v28 }
 0x18c   :  { %384 = vrsqrt.f32 %v148_v38  ;;  %v145_v41 = vsub.f32 %v141_v40, %v143_v39 }
 0x18e   :  { %v149_v42 = vadd.f32 1e-05, %v145_v41 }
 0x190   :  { %386 = vrsqrt.f32 %v149_v42 }
 0x196   :  { %v385_v47 = vpop.eup %384 }
 0x197   :  { %v152_v48 = vmul.f32 %v385_v47, %v146_v45 }
 0x199   :  { %v158_v51 = vmul.f32 %v157_v46, %v152_v48 }
 0x19a   :  { %v387_v52 = vpop.eup %386 }
 0x19b   :  { %v164_v53 = vadd.f32 %v163_v49, %v158_v51  ;;  %v153_v54 = vmul.f32 %v387_v52, %v147_v50 }
 0x19d   :  { %vm166_vm1 = vcmp.ge.f32.partialorder %v164_v53, 0.0  ;;  %v168_v55 = vmul.f32 0.01, %v164_v53  ;;  %v159_v56 = vmul.f32 %v157_v46, %v153_v54 }
 0x19f   :  { %v170_v57 = vsel %vm166_vm1, %v164_v53, %v168_v55  ;;  %v165_v58 = vadd.f32 %v163_v49, %v159_v56 }
 0x1a0   :  { %361 = vmatprep.mubr.msk.f32.mxu1 %vm41_vm0, %v170_v57 }
 0x1a1   :  { %vm167_vm2 = vcmp.ge.f32.partialorder %v165_v58, 0.0  ;;  %v169_v59 = vmul.f32 0.01, %v165_v58 }
 0x1a3   :  { %v171_v60 = vsel %vm167_vm2, %v165_v58, %v169_v59 }
 0x1a4   :  { %362 = vmatmul.mubr.msk.f32.vlgmr.msra.gmra.mrb[0].mxu1 %vm41_vm0, %v171_v60 }
 0x277   :  { %v363_v63 = vpop.f32.mrb[0].mxu1 }
 0x278   :  { %v254_v0 = vadd.f32 %v363_v63, %v175_v62  ;;  %v248_v1 = vpop.f32.mrb[1].mxu1 }
 0x279   :  { %v249_v2 = vadd.f32 %v248_v1, %v175_v62 }
 0x27a   :  { %v260_v3 = vsel %vm41_vm0, %v254_v0, 0.0  ;;  %v266_v4 = vmul.f32 %v254_v0, %v254_v0 }
 0x27b   :  { %261 = vadd.xlane.f32.xlu1 %v260_v3  ;;  %v257_v6 = vsel %vm41_vm0, %v249_v2, 0.0  ;;  %v265_v8 = vmul.f32 %v249_v2, %v249_v2 }
 0x27c   :  { %258 = vadd.xlane.f32.xlu0 %v257_v6  ;;  %v270_v10 = vsel %vm41_vm0, %v266_v4, 0.0 }
 0x27d   :  { %v267_v12 = vsel %vm41_vm0, %v265_v8, 0.0 }
 0x27f   :  { %271 = vadd.xlane.f32.xlu1 %v270_v10 }
 0x280   :  { %268 = vadd.xlane.f32.xlu0 %v267_v12 }
 0x308   :  { %v262_v13 = vpop.xlane.xlu1 %261 }
 0x309   :  { %v264_v14 = vmul.f32 0.03125, %v262_v13  ;;  %v259_v15 = vpop.xlane.xlu0 %258 }
 0x30a   :  { %v263_v16 = vmul.f32 0.03125, %v259_v15 }
 0x30b   :  { %v276_v18 = vmul.f32 %v264_v14, %v264_v14  ;;  %v280_v29 = vsub.f32 %v254_v0, %v264_v14 }
 0x30c   :  { %v272_v17 = vpop.xlane.xlu1 %271  ;;  %v275_v21 = vmul.f32 %v263_v16, %v263_v16  ;;  %v279_v32 = vsub.f32 %v249_v2, %v263_v16 }
 0x30d   :  { %v274_v19 = vmul.f32 0.03125, %v272_v17  ;;  %v269_v20 = vpop.xlane.xlu0 %268 }
 0x30e   :  { %v273_v22 = vmul.f32 0.03125, %v269_v20 }
 0x30f   :  { %v278_v23 = vsub.f32 %v274_v19, %v276_v18 }
 0x310   :  { %v277_v24 = vsub.f32 %v273_v22, %v275_v21 }
 0x311   :  { %v282_v25 = vadd.f32 1e-05, %v278_v23 }
 0x312   :  { %v281_v26 = vadd.f32 1e-05, %v277_v24 }
 0x313   :  { %388 = vrsqrt.f32 %v282_v25 }
 0x314   :  { %390 = vrsqrt.f32 %v281_v26 }
 0x31d   :  { %v389_v31 = vpop.eup %388 }
 0x31e   :  { %v391_v33 = vpop.eup %390  ;;  %v286_v34 = vmul.f32 %v389_v31, %v280_v29 }
 0x31f   :  { %v285_v36 = vmul.f32 %v391_v33, %v279_v32 }
 0x320   :  { %v292_v37 = vmul.f32 %v290_v30, %v286_v34 }
 0x321   :  { %v291_v38 = vmul.f32 %v290_v30, %v285_v36 }
 0x322   :  { %v298_v39 = vadd.f32 %v296_v35, %v292_v37 }
 0x323   :  { %v297_v40 = vadd.f32 %v296_v35, %v291_v38 }
 0x324   :  { %vm300_vm3 = vcmp.ge.f32.partialorder %v298_v39, 0.0  ;;  %v302_v41 = vmul.f32 0.01, %v298_v39 }
 0x325   :  { %vm299_vm4 = vcmp.ge.f32.partialorder %v297_v40, 0.0  ;;  %v301_v42 = vmul.f32 0.01, %v297_v40 }
 0x326   :  { %v304_v9 = vsel %vm300_vm3, %v298_v39, %v302_v41 }
 0x327   :  { %v303_v43 = vsel %vm299_vm4, %v297_v40, %v301_v42  ;;  %v306_v44 = vadd.f32 %v304_v9, %v490_v7 }
 0x328   :  { %v305_v45 = vadd.f32 %v303_v43, %v486_v5 }
 0x329   :  { %308 = vst.msk [vmem:[#allocation5 + $0x8] sm:$0xff] %vm41_vm0, %v306_v44 }
 0x32a   :  { %307 = vst.msk [vmem:[#allocation5] sm:$0xff] %vm41_vm0, %v305_v45 }
 0x32b   :  { %425 = shalt.err (!%p422_p12)
}
 0x32c   :  { %s426_s16 = scalar_lea.hbm %s556_s2, 256 }
 0x32d   :  { %p427_p13 = scmp.ne.s32.totalorder %s556_s2, %s426_s16  ;;  %p430_p0 = scmp.lt.u32.totalorder %s426_s16, %s556_s2 }
 0x32f   :  { %p432_p1 = pnand %p430_p0, %p427_p13 }
 0x331   :  { %435 = shalt.err (!%p432_p1)
}
 0x332   :  { %320 = dma.vmem_to_hbm [thread:$0]  %s315_s12, 256, %s556_s2, [#allocation4], %s441_s19, %s441_s19, %s442_s20  }
 0x333   :  { %438 = dma.done.wait [#allocation4], 256  }
 0x334   :  { %439 = vsyncadd [#allocation4], 4294967040 }
 0x335   :  { %324 = vsyncpa [#allocation3], 1 }
 0x336   :  { %325 = vsyncpa [#allocation4], 1 }

</bundles_post_ra>
